<compile_context>
chip_gen: v5e
topology: v5e:2x2
jax: 0.10.0
libtpu: 0.0.40
codegen_flags: <defaults>
</compile_context>

<pallas_src>
import functools

import jax
import jax.numpy as jnp
from jax import lax
from jax.experimental import pallas as pl
from jax.experimental.pallas import tpu as pltpu


def _channel_attention_kernel(x_ref, w1t_ref, w2t_ref, o_ref,
                              sum_acc, max_acc, *,
                              inv_hw, hw, hw_tile, needs_mask):
    # x_ref:   (TB, C, hw_tile)  batch-tile x channels x spatial-tile
    # w1t_ref: (C, C//r)         == W1.T  (W1 from Conv2d(C, C//r, 1))
    # w2t_ref: (C//r, C)         == W2.T  (W2 from Conv2d(C//r, C, 1))
    # o_ref:   (TB, C) f32       lane-dense attention logits -> sigmoid
    # sum_acc: (TB, C) f32       running spatial sum
    # max_acc: (TB, C) f32       running spatial max
    hw_i = pl.program_id(1)

    @pl.when(hw_i == 0)
    def _init():
        sum_acc[...] = jnp.zeros_like(sum_acc)
        max_acc[...] = jnp.full_like(max_acc, -jnp.inf)

    x = x_ref[...]                                   # input dtype, one tile

    if needs_mask:
        # Only the last spatial tile can be partial; mask invalid lanes with
        # the reduction identities (0 for sum, -inf for max).
        valid = jnp.minimum(hw - hw_i * hw_tile, hw_tile)
        lane = lax.broadcasted_iota(jnp.int32, x.shape, x.ndim - 1)
        mask = lane < valid
        x_sum = jnp.where(mask, x, jnp.zeros((), x.dtype))
        x_max = jnp.where(mask, x, jnp.full((), -jnp.inf, x.dtype))
    else:
        x_sum = x
        x_max = x

    # f32 upcast folded into the reduction (no whole-tile f32 temp);
    # the max is computed in the input dtype and merged into the f32 acc.
    sum_acc[...] += jnp.sum(x_sum, axis=-1, dtype=jnp.float32)
    max_acc[...] = jnp.maximum(max_acc[...],
                               jnp.max(x_max, axis=-1).astype(jnp.float32))

    @pl.when(hw_i == pl.num_programs(1) - 1)
    def _finalize():
        tb = sum_acc.shape[0]
        avg = sum_acc[...] * inv_hw                  # true mean over H*W
        mx = max_acc[...]
        w1t = w1t_ref[...]
        w2t = w2t_ref[...]
        # Stack avg & max into one (2*TB, C) operand: a single fatter MXU
        # matmul against W1^T instead of two skinny ones.
        p = jnp.concatenate([avg, mx], axis=0)
        if w1t.dtype != jnp.float32:
            p = p.astype(w1t.dtype)                  # native bf16 MXU path
        h = jnp.maximum(jnp.dot(p, w1t, preferred_element_type=jnp.float32),
                        0.0)
        # Fused second layer: conv2 is linear with no bias, so
        #   mlp(avg) + mlp(max) == (relu(avg@W1^T) + relu(max@W1^T)) @ W2^T.
        h2 = h[:tb] + h[tb:]
        if w2t.dtype != jnp.float32:
            h2 = h2.astype(w2t.dtype)
        logits = jnp.dot(h2, w2t, preferred_element_type=jnp.float32)
        o_ref[...] = jax.nn.sigmoid(logits)


def _tpu_vmem_and_cores():
    """Best-effort (VMEM capacity, tensorcore count); conservative fallback."""
    vmem_cap = 64 * 1024 * 1024       # smallest per-TC VMEM across targets (v7x)
    num_cores = 1
    try:
        info = pltpu.get_tpu_info()
        for attr in ("vmem_capacity_bytes", "vmem_bytes", "vmem_size_bytes"):
            v = getattr(info, attr, None)
            if v:
                vmem_cap = int(v)
                break
        for attr in ("num_cores", "core_count", "num_tensorcores",
                     "cores_per_chip", "tensorcores_per_chip"):
            v = getattr(info, attr, None)
            if v:
                num_cores = int(v)
                break
    except Exception:
        pass
    return vmem_cap, num_cores


def channel_attention(x_nchw, w1, w2, *, hw_tile=None, batch_tile=None):
    """x_nchw: (N, C, H, W); w1: (C//r, C, 1, 1); w2: (C, C//r, 1, 1).

    Returns sigmoid(MLP(avgpool(x)) + MLP(maxpool(x))) with shape (N, C, 1, 1).
    """
    N, C, H, W = x_nchw.shape
    Cr = w1.shape[0]
    hw = H * W
    itemsize = jnp.dtype(x_nchw.dtype).itemsize
    w_itemsize = jnp.dtype(w1.dtype).itemsize

    x_flat = x_nchw.reshape(N, C, hw)            # glue reshape (plain JAX)
    w1t = w1.reshape(Cr, C).T                    # (C, C//r)
    w2t = w2.reshape(C, Cr).T                    # (C//r, C)

    # ---- per-generation VMEM budgets ---------------------------------------
    vmem_cap, num_cores = _tpu_vmem_and_cores()
    if vmem_cap >= 100 * 1024 * 1024:            # v5e / v6e: 128 MiB VMEM
        x_buf_budget = 28 * 1024 * 1024
        vmem_ceiling = 100 * 1024 * 1024
    else:                                        # v7x: 64 MiB per TC
        x_buf_budget = 14 * 1024 * 1024
        vmem_ceiling = int(vmem_cap * 0.85)

    # Legal batch tiles: divisors of N keeping the (TB, C) f32 output block
    # tiling-legal (TB % 8 == 0, or TB == N for small batches).
    legal_tbs = [d for d in range(1, N + 1)
                 if N % d == 0 and (d == N or d % 8 == 0)]
    base_tb = legal_tbs[0]

    # ---- spatial tile: largest 128-multiple fitting the per-buffer budget ---
    if hw_tile is None:
        if hw <= 128:
            hw_tile = hw                         # single full-extent tile
        else:
            cap = x_buf_budget // max(1, base_tb * C * itemsize)
            cap = max(128, (cap // 128) * 128)
            hw_ceil = ((hw + 127) // 128) * 128
            masked_tile = min(hw_ceil, cap)
            # Prefer an exact 128-multiple divisor of H*W (no masked tail)
            # when it is at least half the budget-limited tile.
            exact = None
            for t in range(masked_tile, 127, -128):
                if hw % t == 0:
                    exact = t
                    break
            if exact is not None and exact * 2 >= masked_tile:
                hw_tile = exact
            else:
                # Spread H*W evenly over the step count to minimize over-read.
                n_steps = -(-hw // masked_tile)
                hw_tile = min(masked_tile,
                              ((-(-hw // n_steps) + 127) // 128) * 128)
    assert hw_tile == hw or hw_tile % 128 == 0, \
        "hw_tile must equal H*W or be a multiple of 128"
    needs_mask = (hw % hw_tile) != 0
    hw_steps = -(-hw // hw_tile)                 # cdiv

    # ---- batch tile ---------------------------------------------------------
    if batch_tile is None:
        batch_tile = base_tb
        for d in legal_tbs:                      # ascending -> largest fitting
            if d * C * hw_tile * itemsize <= x_buf_budget:
                batch_tile = d
        # Megacore: keep >= 2 parallel grid steps when the chip has >= 2 TCs
        # (or when shrinking is essentially free for single-core chips).
        if N // batch_tile < 2:
            smaller = [d for d in legal_tbs
                       if N // d >= 2
                       and (num_cores >= 2
                            or d * C * hw_tile * itemsize >= 4 * 1024 * 1024)]
            if smaller:
                batch_tile = max(smaller)
    assert N % batch_tile == 0, "batch_tile must divide N"
    TB = batch_tile

    # ---- VMEM accounting: blocks + temps + 25% headroom ---------------------
    x_block_bytes = TB * C * hw_tile * itemsize
    vmem_bytes = (2 * x_block_bytes                 # double-buffered x block
                  + 2 * 2 * C * Cr * w_itemsize     # both weights, 2 bufs each
                  + 2 * TB * C * 4                  # f32 sum/max accumulators
                  + 2 * TB * C * 4                  # f32 output block, 2 bufs
                  + TB * C * 4                      # per-tile partial reductions
                  + 4 * TB * max(C, Cr) * 4)        # finalize temporaries
    vmem_needed = int(vmem_bytes * 1.25) + (2 << 20)
    vmem_limit = max(16 * 1024 * 1024, vmem_needed)
    if vmem_needed <= vmem_ceiling:
        vmem_limit = min(vmem_limit, vmem_ceiling)

    kernel = functools.partial(_channel_attention_kernel,
                               inv_hw=1.0 / float(hw), hw=hw,
                               hw_tile=hw_tile, needs_mask=needs_mask)

    out_f32 = pl.pallas_call(
        kernel,
        out_shape=jax.ShapeDtypeStruct((N, C), jnp.float32),
        grid_spec=pltpu.PrefetchScalarGridSpec(
            num_scalar_prefetch=0,
            grid=(N // TB, hw_steps),               # reduction (HW) axis last
            in_specs=[
                pl.BlockSpec((TB, C, hw_tile), lambda b, h: (b, 0, h)),
                pl.BlockSpec((C, Cr), lambda b, h: (0, 0)),
                pl.BlockSpec((Cr, C), lambda b, h: (0, 0)),
            ],
            out_specs=pl.BlockSpec((TB, C), lambda b, h: (b, 0)),
            scratch_shapes=[
                pltpu.VMEM((TB, C), jnp.float32),   # running sum
                pltpu.VMEM((TB, C), jnp.float32),   # running max
            ],
        ),
        compiler_params=pltpu.CompilerParams(
            dimension_semantics=("parallel", "arbitrary"),
            vmem_limit_bytes=int(vmem_limit)),
    )(x_flat, w1t, w2t)

    return out_f32.astype(x_nchw.dtype).reshape(N, C, 1, 1)


def _reference(x, w1, w2):
    """Pure-JAX reference mirroring the PyTorch forward (in f32)."""
    C, Cr = x.shape[1], w1.shape[0]
    xf = x.astype(jnp.float32)
    avg = jnp.mean(xf, axis=(2, 3))               # (N, C)
    mx = jnp.max(xf, axis=(2, 3))                 # (N, C)
    w1m = w1.reshape(Cr, C).astype(jnp.float32)
    w2m = w2.reshape(C, Cr).astype(jnp.float32)

    def mlp(p):
        h = jnp.maximum(p @ w1m.T, 0.0)
        return h @ w2m.T

    out = jax.nn.sigmoid(mlp(avg) + mlp(mx))
    return out.reshape(x.shape[0], C, 1, 1)


if __name__ == "__main__":
    ratio = 8
    key = jax.random.PRNGKey(0)
    kx, k1, k2, kx2 = jax.random.split(key, 4)

    # Main shapes: small, consistent with the module (channels >= ratio).
    N, C, H, W = 2, 32, 16, 16
    Cr = C // ratio

    x = jax.random.normal(kx, (N, C, H, W), dtype=jnp.float32)
    w1 = (jax.random.normal(k1, (Cr, C, 1, 1), dtype=jnp.float32)
          * (1.0 / jnp.sqrt(C)))
    w2 = (jax.random.normal(k2, (C, Cr, 1, 1), dtype=jnp.float32)
          * (1.0 / jnp.sqrt(Cr)))

    ref = _reference(x, w1, w2)

    # 1) Default (auto) tiling: single spatial tile (H*W = 256).
    out = jax.block_until_ready(channel_attention(x, w1, w2))
    assert out.shape == (N, C, 1, 1)
    assert jnp.allclose(out, ref, atol=1e-5, rtol=1e-5), "mismatch (auto)"

    # 2) Explicit 2-step spatial reduction: exercises init/finalize across the
    #    "arbitrary" grid axis (no masking, 256 % 128 == 0).
    out_tiled = jax.block_until_ready(channel_attention(x, w1, w2, hw_tile=128))
    assert jnp.allclose(out_tiled, ref, atol=1e-5, rtol=1e-5), \
        "mismatch (tiled reduction)"

    # 3) Non-128-divisible spatial extent (H*W = 400): masked tail tile,
    #    both auto-selected tile and an explicit 4-step reduction.
    x_odd = jax.random.normal(kx2, (N, C, 20, 20), dtype=jnp.float32)
    ref_odd = _reference(x_odd, w1, w2)
    out_odd = jax.block_until_ready(channel_attention(x_odd, w1, w2))
    assert jnp.allclose(out_odd, ref_odd, atol=1e-5, rtol=1e-5), \
        "mismatch (masked, auto tile)"
    out_odd_t = jax.block_until_ready(
        channel_attention(x_odd, w1, w2, hw_tile=128))
    assert jnp.allclose(out_odd_t, ref_odd, atol=1e-5, rtol=1e-5), \
        "mismatch (masked, 4-step reduction)"

    # 4) bf16 activations (f32 weights): exercises the folded-cast reduction
    #    and native-dtype max path.
    x_bf16 = x.astype(jnp.bfloat16)
    ref_bf16 = _reference(x_bf16, w1, w2)
    out_bf16 = jax.block_until_ready(channel_attention(x_bf16, w1, w2))
    assert jnp.allclose(out_bf16.astype(jnp.float32), ref_bf16,
                        atol=1e-2, rtol=1e-2), "mismatch (bf16)"

    print("KERNEL_OK")
</pallas_src>

<mosaic_0001>
module attributes {stable_mosaic.version = 11 : i64} {
  func.func @_channel_attention_kernel(%arg0: i32, %arg1: i32, %arg2: memref<2x32x256xf32, #tpu.memory_space<vmem>>, %arg3: memref<32x4xf32, #tpu.memory_space<vmem>>, %arg4: memref<4x32xf32, #tpu.memory_space<vmem>>, %arg5: memref<2x32xf32, #tpu.memory_space<vmem>>, %arg6: memref<2x32xf32, #tpu.memory_space<vmem>>, %arg7: memref<2x32xf32, #tpu.memory_space<vmem>>) attributes {dimension_semantics = [#tpu.dimension_semantics<parallel>, #tpu.dimension_semantics<arbitrary>], iteration_bounds = array<i64: 1, 1>, scalar_prefetch = 0 : i64, scratch_operands = 2 : i64, tpu.core_type = #tpu.core_type<tc>, window_params = [{transform_indices = @transform_0, window_bounds = array<i64: 2, 32, 256>}, {pipeline_mode = #tpu.pipeline_mode<synchronous>, transform_indices = @transform_1, window_bounds = array<i64: 32, 4>}, {pipeline_mode = #tpu.pipeline_mode<synchronous>, transform_indices = @transform_2, window_bounds = array<i64: 4, 32>}, {transform_indices = @transform_3, window_bounds = array<i64: 2, 32>}]} {
    %c0_i32 = arith.constant 0 : i32
    %0 = arith.cmpi eq, %arg1, %c0_i32 : i32
    %1 = arith.extui %0 : i1 to i32
    %c0_i32_0 = arith.constant 0 : i32
    %2 = arith.cmpi ne, %1, %c0_i32_0 : i32
    scf.if %2 {
      %cst_14 = arith.constant 0.000000e+00 : f32
      %15 = vector.broadcast %cst_14 : f32 to vector<2x32xf32>
      %c0_15 = arith.constant 0 : index
      %c0_16 = arith.constant 0 : index
      %16 = vector.load %arg6[%c0_15, %c0_16] : memref<2x32xf32, #tpu.memory_space<vmem>>, vector<2x32xf32>
      tpu.vector_store %arg6[%c0_15, %c0_16], %15 {strides = array<i32>} : memref<2x32xf32, #tpu.memory_space<vmem>>, vector<2x32xf32>,
      %cst_17 = arith.constant 0xFF800000 : f32
      %17 = vector.broadcast %cst_17 : f32 to vector<2x32xf32>
      %c0_18 = arith.constant 0 : index
      %c0_19 = arith.constant 0 : index
      %18 = vector.load %arg7[%c0_18, %c0_19] : memref<2x32xf32, #tpu.memory_space<vmem>>, vector<2x32xf32>
      tpu.vector_store %arg7[%c0_18, %c0_19], %17 {strides = array<i32>} : memref<2x32xf32, #tpu.memory_space<vmem>>, vector<2x32xf32>,
    } else {
    }
    %c0 = arith.constant 0 : index
    %c0_1 = arith.constant 0 : index
    %c0_2 = arith.constant 0 : index
    %3 = vector.load %arg2[%c0, %c0_1, %c0_2] : memref<2x32x256xf32, #tpu.memory_space<vmem>>, vector<2x32x256xf32>
    %c0_3 = arith.constant 0 : index
    %c0_4 = arith.constant 0 : index
    %4 = vector.load %arg6[%c0_3, %c0_4] : memref<2x32xf32, #tpu.memory_space<vmem>>, vector<2x32xf32>
    %cst = arith.constant dense<0.000000e+00> : vector<2x32xf32>
    %5 = vector.multi_reduction <add>, %3, %cst [2] : vector<2x32x256xf32> to vector<2x32xf32>
    %6 = arith.addf %4, %5 : vector<2x32xf32>
    %c0_5 = arith.constant 0 : index
    %c0_6 = arith.constant 0 : index
    %7 = vector.load %arg6[%c0_5, %c0_6] : memref<2x32xf32, #tpu.memory_space<vmem>>, vector<2x32xf32>
    tpu.vector_store %arg6[%c0_5, %c0_6], %6 {strides = array<i32>} : memref<2x32xf32, #tpu.memory_space<vmem>>, vector<2x32xf32>,
    %c0_7 = arith.constant 0 : index
    %c0_8 = arith.constant 0 : index
    %8 = vector.load %arg7[%c0_7, %c0_8] : memref<2x32xf32, #tpu.memory_space<vmem>>, vector<2x32xf32>
    %cst_9 = arith.constant dense<0xFF800000> : vector<2x32xf32>
    %9 = vector.multi_reduction <maximumf>, %3, %cst_9 [2] : vector<2x32x256xf32> to vector<2x32xf32>
    %10 = arith.maximumf %8, %9 : vector<2x32xf32>
    %c0_10 = arith.constant 0 : index
    %c0_11 = arith.constant 0 : index
    %11 = vector.load %arg7[%c0_10, %c0_11] : memref<2x32xf32, #tpu.memory_space<vmem>>, vector<2x32xf32>
    tpu.vector_store %arg7[%c0_10, %c0_11], %10 {strides = array<i32>} : memref<2x32xf32, #tpu.memory_space<vmem>>, vector<2x32xf32>,
    %c0_i32_12 = arith.constant 0 : i32
    %12 = arith.cmpi eq, %arg1, %c0_i32_12 : i32
    %13 = arith.extui %12 : i1 to i32
    %c0_i32_13 = arith.constant 0 : i32
    %14 = arith.cmpi ne, %13, %c0_i32_13 : i32
    scf.if %14 {
      %c0_14 = arith.constant 0 : index
      %c0_15 = arith.constant 0 : index
      %15 = vector.load %arg6[%c0_14, %c0_15] : memref<2x32xf32, #tpu.memory_space<vmem>>, vector<2x32xf32>
      %cst_16 = arith.constant 3.906250e-03 : f32
      %16 = vector.broadcast %cst_16 : f32 to vector<2x32xf32>
      %17 = arith.mulf %15, %16 : vector<2x32xf32>
      %c0_17 = arith.constant 0 : index
      %c0_18 = arith.constant 0 : index
      %18 = vector.load %arg7[%c0_17, %c0_18] : memref<2x32xf32, #tpu.memory_space<vmem>>, vector<2x32xf32>
      %c0_19 = arith.constant 0 : index
      %c0_20 = arith.constant 0 : index
      %19 = vector.load %arg3[%c0_19, %c0_20] : memref<32x4xf32, #tpu.memory_space<vmem>>, vector<32x4xf32>
      %c0_21 = arith.constant 0 : index
      %c0_22 = arith.constant 0 : index
      %20 = vector.load %arg4[%c0_21, %c0_22] : memref<4x32xf32, #tpu.memory_space<vmem>>, vector<4x32xf32>
      %21 = tpu.concatenate %17, %18 in 0 : vector<2x32xf32>, vector<2x32xf32> -> vector<4x32xf32>
      %cst_23 = arith.constant dense<0.000000e+00> : vector<4x4xf32>
      %22 = tpu.matmul %21, %19, %cst_23 {dimension_numbers = #tpu.dot_dimension_numbers<[1], [0], [0], [1], [0, 0, 1, 1], [], []>} : vector<4x32xf32>, vector<32x4xf32>, vector<4x4xf32> -> vector<4x4xf32>
      %cst_24 = arith.constant 0.000000e+00 : f32
      %23 = vector.broadcast %cst_24 : f32 to vector<4x4xf32>
      %24 = arith.maximumf %22, %23 : vector<4x4xf32>
      %25 = vector.extract_strided_slice %24 {offsets = [0, 0], sizes = [2, 4], strides = [1, 1]} : vector<4x4xf32> to vector<2x4xf32>
      %26 = vector.extract_strided_slice %24 {offsets = [2, 0], sizes = [2, 4], strides = [1, 1]} : vector<4x4xf32> to vector<2x4xf32>
      %27 = arith.addf %25, %26 : vector<2x4xf32>
      %cst_25 = arith.constant dense<0.000000e+00> : vector<2x32xf32>
      %28 = tpu.matmul %27, %20, %cst_25 {dimension_numbers = #tpu.dot_dimension_numbers<[1], [0], [0], [1], [0, 0, 1, 1], [], []>} : vector<2x4xf32>, vector<4x32xf32>, vector<2x32xf32> -> vector<2x32xf32>
      %29 = arith.negf %28 : vector<2x32xf32>
      %30 = math.exp %29 : vector<2x32xf32>
      %cst_26 = arith.constant 1.000000e+00 : f32
      %31 = vector.broadcast %cst_26 : f32 to vector<2x32xf32>
      %32 = arith.addf %31, %30 : vector<2x32xf32>
      %33 = arith.divf %31, %32 : vector<2x32xf32>
      %c0_27 = arith.constant 0 : index
      %c0_28 = arith.constant 0 : index
      %34 = vector.load %arg5[%c0_27, %c0_28] : memref<2x32xf32, #tpu.memory_space<vmem>>, vector<2x32xf32>
      tpu.vector_store %arg5[%c0_27, %c0_28], %33 {strides = array<i32>} : memref<2x32xf32, #tpu.memory_space<vmem>>, vector<2x32xf32>,
    } else {
    }
    return
  }
  func.func @transform_0(%arg0: i32, %arg1: i32) -> (i32, i32, i32) {
    %c0_i32 = arith.constant 0 : i32
    %c0_i32_0 = arith.constant 0 : i32
    return %arg0, %c0_i32, %arg1 : i32, i32, i32
  }
  func.func @transform_1(%arg0: i32, %arg1: i32) -> (i32, i32) {
    %c0_i32 = arith.constant 0 : i32
    %c0_i32_0 = arith.constant 0 : i32
    %c0_i32_1 = arith.constant 0 : i32
    return %c0_i32, %c0_i32_0 : i32, i32
  }
  func.func @transform_2(%arg0: i32, %arg1: i32) -> (i32, i32) {
    %c0_i32 = arith.constant 0 : i32
    %c0_i32_0 = arith.constant 0 : i32
    %c0_i32_1 = arith.constant 0 : i32
    return %c0_i32, %c0_i32_0 : i32, i32
  }
  func.func @transform_3(%arg0: i32, %arg1: i32) -> (i32, i32) {
    %c0_i32 = arith.constant 0 : i32
    %c0_i32_0 = arith.constant 0 : i32
    return %arg0, %c0_i32 : i32, i32
  }
}

</mosaic_0001>

<bundles_post_ra>
// kernel: tpu_custom_call.1
= control target key start
LH: loop header
LB: loop body
LE: loop exit
PB: predicated region body
PF: predicated region fallthrough
CT: control target
= control target key end

     0   :  { %8 = vsyncpa [#allocation5], 0  ;;  %s408_s0 = inlined_call_operand.hbm [shape: f32[2,32,256], index: 0, kind: input, shape index: {}]   ;;  %s409_s1 = inlined_call_operand.vmem [shape: f32[32,4], index: 1, kind: input, shape index: {}]   ;;  %s410_s2 = inlined_call_operand.vmem [shape: f32[4,32], index: 2, kind: input, shape index: {}]   ;;  %s411_s3 = inlined_call_operand.hbm [shape: f32[2,32], index: 3, kind: output, shape index: {}]  }
   0x1   :  { %9 = vsyncpa [#allocation6], 0  ;;  %s14_s14 = sshll.u32 %s408_s0, 4  ;;  %s342_s15 = smov [#allocation4]   ;;  %s15_s14 = int_to_ptr.hbm [resolvable:$true] %s14_s14 }
   0x2   :  { %s16_s16 = sshll.u32 %s342_s15, 4  ;;  %s343_s17 = smov 256   ;;  %s17_s16 = int_to_ptr.vmem [resolvable:$true] %s16_s16 }
   0x3   :  { %s344_s18 = smov 16  }
   0x4   :  { %22 = dma.hbm_to_vmem [thread:$0]  %s15_s14, 2048, %s17_s16, [#allocation5], %s343_s17, %s343_s17, %s344_s18  }
   0x5   :  { %338 = dma.done.wait [#allocation5], 2048  }
   0x6   :  { %339 = vsyncadd [#allocation5], 4294965248  ;;  %v46_v0 = vld [vmem:[#allocation4 + $0x40] sm:$0xff]  ;;  %v47_v1 = vld [vmem:[#allocation4 + $0x48] sm:$0xff]  ;;  %vm35_vm0 = vcmask 254976   ;;  %v345_v32 = vmov 0.0   ;;  %v87_v46 = vlaneseq }
   0x7   :  { %v38_v2 = vld [vmem:[#allocation4] sm:$0xff]  ;;  %v67_v3 = vadd.f32 %v47_v1, %v46_v0  ;;  %v39_v4 = vld [vmem:[#allocation4 + $0x8] sm:$0xff]  ;;  %v48_v7 = vld [vmem:[#allocation4 + $0x50] sm:$0xff]  ;;  %v128_v18 = vmax.f32 %v46_v0, %v47_v1  ;;  %36 = vst.msk [vmem:[#allocation2] sm:$0x3] %vm35_vm0, %v345_v32  ;;  %v346_v36 = vmov -inf  }
   0x8   :  { %v116_v5 = vmax.f32 %v38_v2, %v39_v4  ;;  %v55_v6 = vadd.f32 %v39_v4, %v38_v2  ;;  %v49_v8 = vld [vmem:[#allocation4 + $0x58] sm:$0xff]  ;;  %v40_v9 = vld [vmem:[#allocation4 + $0x10] sm:$0xff]  ;;  %v42_v14 = vld [vmem:[#allocation4 + $0x20] sm:$0xff]  ;;  %37 = vst.msk [vmem:[#allocation3] sm:$0x3] %vm35_vm0, %v346_v36  ;;  %v88_v48 = vand.u32 127, %v87_v46 }
   0x9   :  { %68 = vadd.xlane.f32.xlu1 %v67_v3  ;;  %v41_v10 = vld [vmem:[#allocation4 + $0x18] sm:$0xff]  ;;  %v70_v11 = vadd.f32 %v49_v8, %v48_v7  ;;  %v43_v15 = vld [vmem:[#allocation4 + $0x28] sm:$0xff]  ;;  %v131_v16 = vmax.f32 %v48_v7, %v49_v8  ;;  %v50_v19 = vld [vmem:[#allocation4 + $0x60] sm:$0xff]  ;;  %vm92_vm1 = vcmask 130112   ;;  %vm96_vm2 = vcmask 195712   ;;  %s266_s30 = sshll.u32 %s411_s3, 4  ;;  %s267_s30 = int_to_ptr.hbm [resolvable:$true] %s266_s30 }
   0xa   :  { %117 = vmax.xlane.f32.xlu2 %v116_v5  ;;  %56 = vadd.xlane.f32.xlu0 %v55_v6  ;;  %v119_v12 = vmax.f32 %v40_v9, %v41_v10  ;;  %v58_v13 = vadd.f32 %v41_v10, %v40_v9  ;;  %v61_v17 = vadd.f32 %v43_v15, %v42_v14  ;;  %v51_v20 = vld [vmem:[#allocation4 + $0x68] sm:$0xff]  ;;  %v52_v24 = vld [vmem:[#allocation4 + $0x70] sm:$0xff]  ;;  %v53_v25 = vld [vmem:[#allocation4 + $0x78] sm:$0xff]  ;;  %v90_v50 = vadd.s32 4294967288, %v88_v48 }
   0xb   :  { %v122_v21 = vmax.f32 %v42_v14, %v43_v15  ;;  %v134_v22 = vmax.f32 %v50_v19, %v51_v20  ;;  %v73_v23 = vadd.f32 %v51_v20, %v50_v19  ;;  %v44_v26 = vld [vmem:[#allocation4 + $0x30] sm:$0xff]  ;;  %v45_v27 = vld [vmem:[#allocation4 + $0x38] sm:$0xff]  ;;  %v76_v28 = vadd.f32 %v53_v25, %v52_v24  ;;  %v173_v45 = vld [vmem:[%s409_s1 + $0x8] sm:$0xff] }
   0xc   :  { %v125_v29 = vmax.f32 %v44_v26, %v45_v27  ;;  %v64_v30 = vadd.f32 %v45_v27, %v44_v26  ;;  %v137_v31 = vmax.f32 %v52_v24, %v53_v25  ;;  %v175_v41 = vld [vmem:[%s409_s1 + $0x18] sm:$0xff]  ;;  %v174_v42 = vld [vmem:[%s409_s1 + $0x10] sm:$0xff]  ;;  %v172_v47 = vld [vmem:[%s409_s1] sm:$0xff]  ;;  %v94_v52 = vadd.s32 4294967280, %v88_v48 }
   0xd   :  { %198 = vmatpush.msra.mxu0 %v175_v41  ;;  %v98_v56 = vadd.s32 4294967272, %v88_v48  ;;  %vm100_vm3 = vcmask 261312   ;;  %vm109_vm4 = vcmask 1041409   ;;  %vm180_vm5 = vcmask 1041408  }
   0xe   :  { %v54_v6 = vld [vmem:[#allocation2] sm:$0x3]  ;;  %vm182_vm6 = vcmask 261120   ;;  %vm215_vm7 = vcmask 1043456   ;;  %vm211_vm8 = vcmask 31744  }
   0xf   :  { %199 = vmatpush.msra.mxu0 %v174_v42  ;;  %v115_v24 = vld [vmem:[#allocation3] sm:$0x3] }
  0x11   :  { %71 = vadd.xlane.f32.xlu1 %v70_v11  ;;  %200 = vmatpush.msra.mxu0 %v173_v45 }
  0x12   :  { %120 = vmax.xlane.f32.xlu2 %v119_v12  ;;  %59 = vadd.xlane.f32.xlu0 %v58_v13 }
  0x13   :  { %201 = vmatpush.msra.mxu0 %v172_v47 }
  0x19   :  { %132 = vmax.xlane.f32.xlu1 %v131_v16 }
  0x1a   :  { %62 = vadd.xlane.f32.xlu2 %v61_v17  ;;  %129 = vmax.xlane.f32.xlu0 %v128_v18 }
  0x21   :  { %123 = vmax.xlane.f32.xlu1 %v122_v21 }
  0x22   :  { %135 = vmax.xlane.f32.xlu2 %v134_v22  ;;  %74 = vadd.xlane.f32.xlu0 %v73_v23 }
  0x29   :  { %77 = vadd.xlane.f32.xlu1 %v76_v28 }
  0x2a   :  { %126 = vmax.xlane.f32.xlu2 %v125_v29  ;;  %65 = vadd.xlane.f32.xlu0 %v64_v30 }
  0x32   :  { %138 = vmax.xlane.f32.xlu0 %v137_v31 }
  0x7c   :  { %v69_v33 = vpop.xlane.xlu1 %68 }
  0x7d   :  { %v118_v34 = vpop.xlane.xlu2 %117  ;;  %v57_v35 = vpop.xlane.xlu0 %56  ;;  %v102_v54 = vperm.slane %v69_v33, %v88_v48 }
  0x7e   :  { %v89_v60 = vperm.slane %v57_v35, %v88_v48  ;;  %v148_v8 = vperm.slane %v118_v34, %v88_v48  ;;  %v176_v34 = vld [vmem:[%s410_s2] sm:$0xf]  ;;  %s347_s2 = smov [#allocation7]  }
  0x7f   :  { %277 = vmatpush.msk.msra.mxu1 %vm215_vm7, %v176_v34  ;;  %s264_s27 = sshll.u32 %s347_s2, 4  ;;  %s265_s27 = int_to_ptr.vmem [resolvable:$true] %s264_s27 }
  0x84   :  { %v72_v37 = vpop.xlane.xlu1 %71 }
  0x85   :  { %v121_v38 = vpop.xlane.xlu2 %120  ;;  %v60_v39 = vpop.xlane.xlu0 %59  ;;  %v103_v55 = vperm.slane %v72_v37, %v90_v50 }
  0x86   :  { %v91_v57 = vperm.slane %v60_v39, %v90_v50  ;;  %v149_v11 = vperm.slane %v121_v38, %v90_v50 }
  0x87   :  { %v104_v62 = vsel %vm92_vm1, %v103_v55, %v102_v54 }
  0x88   :  { %v93_v1 = vsel %vm92_vm1, %v91_v57, %v89_v60  ;;  %v150_v19 = vsel %vm92_vm1, %v149_v11, %v148_v8 }
  0x8c   :  { %v133_v40 = vpop.xlane.xlu1 %132 }
  0x8d   :  { %v63_v43 = vpop.xlane.xlu2 %62  ;;  %v130_v44 = vpop.xlane.xlu0 %129  ;;  %v156_v12 = vperm.slane %v133_v40, %v90_v50 }
  0x8e   :  { %v95_v59 = vperm.slane %v63_v43, %v94_v52  ;;  %v155_v13 = vperm.slane %v130_v44, %v88_v48 }
  0x90   :  { %v97_v4 = vsel %vm96_vm2, %v95_v59, %v93_v1  ;;  %v157_v20 = vsel %vm92_vm1, %v156_v12, %v155_v13 }
  0x94   :  { %v124_v49 = vpop.xlane.xlu1 %123 }
  0x95   :  { %v75_v51 = vpop.xlane.xlu0 %74  ;;  %v136_v53 = vpop.xlane.xlu2 %135  ;;  %v151_v15 = vperm.slane %v124_v49, %v94_v52 }
  0x96   :  { %v105_v58 = vperm.slane %v75_v51, %v94_v52  ;;  %v158_v16 = vperm.slane %v136_v53, %v94_v52 }
  0x97   :  { %v152_v22 = vsel %vm96_vm2, %v151_v15, %v150_v19 }
  0x98   :  { %v106_v2 = vsel %vm96_vm2, %v105_v58, %v104_v62  ;;  %v159_v23 = vsel %vm96_vm2, %v158_v16, %v157_v20 }
  0x9c   :  { %v78_v61 = vpop.xlane.xlu1 %77 }
  0x9d   :  { %v107_v63 = vperm.slane %v78_v61, %v98_v56  ;;  %v66_v0 = vpop.xlane.xlu0 %65  ;;  %v127_v9 = vpop.xlane.xlu2 %126 }
  0x9e   :  { %v99_v3 = vperm.slane %v66_v0, %v98_v56  ;;  %v153_v17 = vperm.slane %v127_v9, %v98_v56 }
  0x9f   :  { %v108_v5 = vsel %vm100_vm3, %v107_v63, %v106_v2 }
  0xa0   :  { %v101_v7 = vsel %vm100_vm3, %v99_v3, %v97_v4  ;;  %v154_v25 = vsel %vm100_vm3, %v153_v17, %v152_v22 }
  0xa1   :  { %v110_v10 = vsel %vm109_vm4, %v108_v5, %v101_v7 }
  0xa2   :  { %v112_v14 = vadd.f32 %v110_v10, %v54_v6 }
  0xa4   :  { %114 = vst.msk [vmem:[#allocation2] sm:$0x3] %vm35_vm0, %v112_v14 }
  0xa5   :  { %v139_v18 = vpop.xlane.xlu0 %138 }
  0xa6   :  { %v160_v21 = vperm.slane %v139_v18, %v98_v56 }
  0xa8   :  { %v161_v26 = vsel %vm100_vm3, %v160_v21, %v159_v23 }
  0xa9   :  { %v162_v27 = vsel %vm109_vm4, %v161_v26, %v154_v25 }
  0xaa   :  { %v164_v28 = vmax.f32 %v115_v24, %v162_v27 }
  0xab   :  { %v169_v29 = vld [vmem:[#allocation2] sm:$0x3] }
  0xac   :  { %165 = vst.msk [vmem:[#allocation3] sm:$0x3] %vm35_vm0, %v164_v28  ;;  %v170_v31 = vmul.f32 0.00390625, %v169_v29 }
  0xb3   :  { %v171_v30 = vld [vmem:[#allocation3] sm:$0x3] }
  0xb4   :  { %v178_v32 = vrot.slane %v171_v30, 6 }
  0xb6   :  { %v181_v33 = vsel %vm180_vm5, %v170_v31, %v178_v32 }
  0xb7   :  { %276 = vmatmul.msk.f32.vlgmr.msra.gmra.mxu0 %vm182_vm6, %v181_v33 }
 0x134   :  { %v203_v35 = vpop.f32.mrf.mxu0 }
 0x135   :  { %v206_v36 = vmax.f32 %v203_v35, 0.0 }
 0x137   :  { %v208_v37 = vrot.slane %v206_v36, 2 }
 0x139   :  { %v210_v38 = vadd.f32 %v208_v37, %v206_v36 }
 0x13b   :  { %278 = vmatmul.msk.f32.vlgmr.msra.gmra.mxu1 %vm211_vm8, %v210_v38 }
 0x1b8   :  { %v236_v39 = vpop.f32.mrf.mxu1 }
 0x1b9   :  { %v279_v40 = vmul.f32 -1.442695, %v236_v39 }
 0x1bb   :  { %286 = vpow2.f32 %v279_v40 }
 0x1c1   :  { %v287_v41 = vpop.eup %286 }
 0x1c2   :  { %v242_v42 = vadd.f32 1.0, %v287_v41 }
 0x1c4   :  { %288 = vrcp.f32 %v242_v42  ;;  %v254_v46 = vand.u32 2147483648, %v242_v42  ;;  %v252_v48 = vand.u32 2147483647, %v242_v42  ;;  %vm248_vm10 = vweird.f32 %v242_v42 }
 0x1c6   :  { %v255_v50 = vor.u32 1.1754944e-38, %v254_v46  ;;  %vm253_vm12 = vcmp.eq.f32.partialorder %v252_v48, 8.507059e+37 }
 0x1ca   :  { %v289_v43 = vpop.eup %288 }
 0x1cb   :  { %v244_v44 = vmul.f32 %v289_v43, %v242_v42  ;;  %vm249_vm9 = vweird.f32 %v289_v43 }
 0x1cc   :  { %vm250_vm11 = vmor %vm248_vm10, %vm249_vm9 }
 0x1cd   :  { %v245_v45 = vsub.f32 1.0, %v244_v44 }
 0x1cf   :  { %v246_v47 = vmul.f32 %v289_v43, %v245_v45 }
 0x1d1   :  { %v247_v49 = vadd.f32 %v289_v43, %v246_v47 }
 0x1d3   :  { %v251_v51 = vsel %vm250_vm11, %v289_v43, %v247_v49 }
 0x1d4   :  { %v256_v52 = vsel %vm253_vm12, %v255_v50, %v251_v51 }
 0x1d5   :  { %258 = vst.msk [vmem:[#allocation7] sm:$0x3] %vm35_vm0, %v256_v52 }
 0x1d6   :  { %269 = dma.vmem_to_hbm [thread:$0]  %s265_s27, 32, %s267_s30, [#allocation6]  }
 0x1d7   :  { %340 = dma.done.wait [#allocation6], 32  }
 0x1d8   :  { %341 = vsyncadd [#allocation6], 4294967264 }
 0x1d9   :  { %274 = vsyncpa [#allocation5], 1 }
 0x1da   :  { %275 = vsyncpa [#allocation6], 1 }

</bundles_post_ra>
